<compile_context>
chip_gen: v6e
topology: v6e:2x2x1
jax: 0.10.0
libtpu: 0.0.40
codegen_flags: <defaults>
</compile_context>

<pallas_src>
import functools

import numpy as np

import jax
import jax.numpy as jnp
from jax.experimental import pallas as pl
from jax.experimental.pallas import tpu as pltpu

_NCORES = 2                       # megacore split for BN stats (v7x); harmless on 1-TC chips
_FAST_PATH_BYTES = 4 * 1024 * 1024


def _vmem_limit_bytes():
    # Generation-aware scoped-VMEM budget: ~3/4 of physical VMEM, capped at 96 MiB.
    try:
        cap = getattr(pltpu.get_tpu_info(), "vmem_capacity_bytes", None)
        if cap:
            return int(min(cap * 3 // 4, 96 * 1024 * 1024))
    except Exception:
        pass
    return 48 * 1024 * 1024       # safe fallback (v7x has 64 MiB physical VMEM)


def _cparams(vmem_limit, *semantics):
    return pltpu.CompilerParams(
        dimension_semantics=tuple(semantics),
        vmem_limit_bytes=int(vmem_limit),
    )


def _row_tile(n, d, dtype, vmem_limit, override=None):
    """Large, dtype-aware row tile so each (tm, d) block is a multi-MiB DMA."""
    itemsize = jnp.dtype(dtype).itemsize
    gran = max(8, 32 // itemsize)               # 8 rows f32, 16 bf16, 32 int8/fp8
    if override is not None:
        tm = max(gran, (int(override) // gran) * gran)
    else:
        budget = max(vmem_limit // 6, 1 << 22)  # per-buffer; in/out are double-buffered
        tm = max(gran, (budget // max(d * itemsize, 1)) // gran * gran)
    return n if tm >= n else tm


# ----------------------------------------------------------------------------
# layernorm
# ----------------------------------------------------------------------------

def _layernorm_kernel(x_ref, w_ref, b_ref, o_ref):
    # nn.LayerNorm over the last dim, biased variance, eps=1e-5.
    x = x_ref[...].astype(jnp.float32)
    mean = jnp.mean(x, axis=-1, keepdims=True)
    xc = x - mean
    var = jnp.mean(xc * xc, axis=-1, keepdims=True)
    y = xc * jax.lax.rsqrt(var + 1e-5)
    o_ref[...] = (y * w_ref[...].astype(jnp.float32)
                  + b_ref[...].astype(jnp.float32)).astype(o_ref.dtype)


# ----------------------------------------------------------------------------
# batchnorm (training-mode batch statistics)
# ----------------------------------------------------------------------------

def _bn_fused_kernel(x_ref, w_ref, b_ref, o_ref):
    # Small-input fast path: x VMEM-resident, exact two-pass stats + normalize.
    x = x_ref[...].astype(jnp.float32)
    mean = jnp.mean(x, axis=0, keepdims=True)
    xc = x - mean
    var = jnp.mean(xc * xc, axis=0, keepdims=True)
    scale = w_ref[...].astype(jnp.float32) * jax.lax.rsqrt(var + 1e-5)
    o_ref[...] = (xc * scale + b_ref[...].astype(jnp.float32)).astype(o_ref.dtype)


def _bn_partial_kernel(x_ref, part_ref, *, n_rows, tile_rows, tiles_per_core):
    # Pass 1 (general): per-core partial sum / sum-of-squares over the node axis.
    c = pl.program_id(0)
    j = pl.program_id(1)
    t = c * tiles_per_core + j                      # intended global tile index
    x = x_ref[...].astype(jnp.float32)
    rows = jax.lax.broadcasted_iota(jnp.int32, (tile_rows, 1), 0) + t * tile_rows
    x = jnp.where(rows < n_rows, x, 0.0)            # mask partial / out-of-range tiles
    s = jnp.sum(x, axis=0, keepdims=True)
    sq = jnp.sum(x * x, axis=0, keepdims=True)
    tile_sums = jnp.concatenate([s, sq], axis=0)    # single (2, D) update per tile

    @pl.when(j == 0)
    def _init():
        part_ref[0] = tile_sums

    @pl.when(j > 0)
    def _acc():
        part_ref[0] += tile_sums


def _bn_apply_kernel(x_ref, part_ref, w_ref, b_ref, o_ref, *, n_rows):
    # Pass 2: fold tiny per-core partials into scale/shift (recomputed per tile,
    # vreg-resident) and apply the FMA -> pure read-x / write-out HBM stream.
    sums = part_ref[0]
    for c in range(1, part_ref.shape[0]):
        sums = sums + part_ref[c]                   # (2, D)
    inv_n = jnp.float32(1.0 / n_rows)
    mean = sums[0:1, :] * inv_n
    # NOTE: E[x^2] - mean^2 in f32 can cancel for data with |mean| >> std.
    var = jnp.maximum(sums[1:2, :] * inv_n - mean * mean, 0.0)
    scale = w_ref[...].astype(jnp.float32) * jax.lax.rsqrt(var + 1e-5)
    shift = b_ref[...].astype(jnp.float32) - mean * scale
    x = x_ref[...].astype(jnp.float32)
    o_ref[...] = (x * scale + shift).astype(o_ref.dtype)


# ----------------------------------------------------------------------------
# graphnorm
# ----------------------------------------------------------------------------

def _gn_fold(sum_x, sum_xx, cnt, w, ms, b):
    # Fold per-graph sums into per-graph scale/shift:
    #   mean = sum_x / cnt
    #   var  = E[(x - ms*mean)^2] = E[x^2] - ms*mean*(2*mean - ms*mean)
    #   out  = x * (w * rsqrt(var+eps)) + (b - ms*mean * w * rsqrt(var+eps))
    # Single-traversal variance (mild f32 cancellation risk vs two-pass).
    inv_n = 1.0 / jnp.maximum(cnt, 1.0)             # guard zero-node graphs
    mean = sum_x * inv_n
    ex2 = sum_xx * inv_n
    msm = ms * mean
    var = jnp.maximum(ex2 - (2.0 * mean - msm) * msm, 0.0)
    scale = w * jax.lax.rsqrt(var + 1e-6)
    shift = b - msm * scale
    return scale, shift


def _one_hot(seg, num_graphs, valid=None):
    gids = jax.lax.broadcasted_iota(jnp.int32, (1, num_graphs), 1)
    oh = (seg == gids).astype(jnp.float32)          # (rows, B)
    if valid is not None:
        oh = jnp.where(valid, oh, 0.0)
    return oh


def _gn_fused_kernel(x_ref, seg_ref, cnt_ref, w_ref, b_ref, ms_ref, o_ref, *, num_graphs):
    # Small-input fast path: stats + apply fused, x VMEM-resident.
    x = x_ref[...].astype(jnp.float32)
    oh = _one_hot(seg_ref[...], num_graphs)                                 # (N, B)
    sum_x = jnp.einsum('nb,nd->bd', oh, x, preferred_element_type=jnp.float32)
    sum_xx = jnp.einsum('nb,nd->bd', oh, x * x, preferred_element_type=jnp.float32)
    scale_g, shift_g = _gn_fold(sum_x, sum_xx, cnt_ref[...],
                                w_ref[...].astype(jnp.float32),
                                ms_ref[...].astype(jnp.float32),
                                b_ref[...].astype(jnp.float32))
    scale = jnp.dot(oh, scale_g, preferred_element_type=jnp.float32)        # (N, D)
    shift = jnp.dot(oh, shift_g, preferred_element_type=jnp.float32)
    o_ref[...] = (x * scale + shift).astype(o_ref.dtype)


def _gn_stats_kernel(x_ref, seg_ref, cnt_ref, w_ref, b_ref, ms_ref, ss_ref,
                     *, n_rows, tile_rows, num_graphs):
    # Pass 1 (general): stream x once in big tiles; per-graph segment sums via a
    # (tm, B) one-hot matmul on the otherwise-idle MXU; fold at the last tile.
    # VMEM use is bounded by the row tile + a tiny (2, B, D) accumulator.
    i = pl.program_id(0)
    x = x_ref[...].astype(jnp.float32)
    rows = jax.lax.broadcasted_iota(jnp.int32, (tile_rows, 1), 0) + i * tile_rows
    valid = rows < n_rows
    x = jnp.where(valid, x, 0.0)                    # padded rows may hold garbage
    oh = _one_hot(seg_ref[...], num_graphs, valid)

    @pl.when(i == 0)
    def _init():
        ss_ref[...] = jnp.zeros_like(ss_ref)

    ss_ref[0] += jnp.einsum('nb,nd->bd', oh, x, preferred_element_type=jnp.float32)
    ss_ref[1] += jnp.einsum('nb,nd->bd', oh, x * x, preferred_element_type=jnp.float32)

    @pl.when(i == pl.num_programs(0) - 1)
    def _finalize():
        scale_g, shift_g = _gn_fold(ss_ref[0], ss_ref[1], cnt_ref[...],
                                    w_ref[...].astype(jnp.float32),
                                    ms_ref[...].astype(jnp.float32),
                                    b_ref[...].astype(jnp.float32))
        ss_ref[0] = scale_g
        ss_ref[1] = shift_g


def _gn_apply_kernel(x_ref, seg_ref, ss_ref, o_ref, *, num_graphs):
    # Pass 2 (general): per-row scale/shift rebuilt in-kernel from the tiny (2, B, D)
    # table via one-hot matmuls -> no HBM-materialized per-node (N, D) gather.
    x = x_ref[...].astype(jnp.float32)
    oh = _one_hot(seg_ref[...], num_graphs)
    scale = jnp.dot(oh, ss_ref[0], preferred_element_type=jnp.float32)
    shift = jnp.dot(oh, ss_ref[1], preferred_element_type=jnp.float32)
    o_ref[...] = (x * scale + shift).astype(o_ref.dtype)


# ----------------------------------------------------------------------------
# Module wrapper
# ----------------------------------------------------------------------------

class Graph:
    """Minimal stand-in for the DGL batched-graph object used by forward()."""

    def __init__(self, batch_num_nodes):
        self.batch_num_nodes = [int(v) for v in batch_num_nodes]


class NormLayer:
    def __init__(self, hidden_dim, norm_type, *, block_rows=None, small_fast_path=True):
        if norm_type not in ("batchnorm", "layernorm", "graphnorm"):
            raise NotImplementedError
        self.hidden_dim = hidden_dim
        self.norm_type = norm_type
        self.block_rows = block_rows            # optional row-tile override (testing)
        self.small_fast_path = small_fast_path
        self.vmem_limit = _vmem_limit_bytes()
        # Deterministic init matching the PyTorch module (gamma=1, beta=0, mean_scale=1).
        self.weight = jnp.ones((1, hidden_dim), jnp.float32)
        self.bias = jnp.zeros((1, hidden_dim), jnp.float32)
        if norm_type == "graphnorm":
            self.mean_scale = jnp.ones((1, hidden_dim), jnp.float32)
        # TODO(synk): nn.BatchNorm1d running_mean/running_var tracking (eval mode /
        # momentum update) is not implemented; training-mode batch statistics only.

    def __call__(self, graph, x):
        if self.norm_type == "batchnorm":
            return self._batchnorm(x)
        if self.norm_type == "layernorm":
            return self._layernorm(x)
        return self._graphnorm(graph, x)

    def _small(self, x):
        n, d = x.shape
        return self.small_fast_path and n * d * x.dtype.itemsize <= _FAST_PATH_BYTES

    # ------------------------------------------------------------------ #
    def _layernorm(self, x):
        n, d = x.shape
        tm = _row_tile(n, d, x.dtype, self.vmem_limit, self.block_rows)
        return pl.pallas_call(
            _layernorm_kernel,
            out_shape=jax.ShapeDtypeStruct((n, d), x.dtype),
            grid=(pl.cdiv(n, tm),),
            in_specs=[
                pl.BlockSpec((tm, d), lambda i: (i, 0)),
                pl.BlockSpec((1, d), lambda i: (0, 0)),
                pl.BlockSpec((1, d), lambda i: (0, 0)),
            ],
            out_specs=pl.BlockSpec((tm, d), lambda i: (i, 0)),
            compiler_params=_cparams(self.vmem_limit, "parallel"),
        )(x, self.weight, self.bias)

    # ------------------------------------------------------------------ #
    def _batchnorm(self, x):
        n, d = x.shape

        if self._small(x):
            # Fused fast path: one launch, x read from HBM exactly once.
            return pl.pallas_call(
                _bn_fused_kernel,
                out_shape=jax.ShapeDtypeStruct((n, d), x.dtype),
                grid=(1,),
                in_specs=[
                    pl.BlockSpec((n, d), lambda i: (0, 0)),
                    pl.BlockSpec((1, d), lambda i: (0, 0)),
                    pl.BlockSpec((1, d), lambda i: (0, 0)),
                ],
                out_specs=pl.BlockSpec((n, d), lambda i: (0, 0)),
                compiler_params=_cparams(self.vmem_limit, "arbitrary"),
            )(x, self.weight, self.bias)

        tm = _row_tile(n, d, x.dtype, self.vmem_limit, self.block_rows)
        n_tiles = pl.cdiv(n, tm)
        tiles_per_core = pl.cdiv(n_tiles, _NCORES)

        def x_map(c, j):
            # Clamp the block index for out-of-range tiles; the kernel masks them.
            return (jnp.minimum(c * tiles_per_core + j, n_tiles - 1), 0)

        # Pass 1: per-core partial (2, D) sum / sum-of-squares (megacore on v7x).
        part = pl.pallas_call(
            functools.partial(_bn_partial_kernel, n_rows=n, tile_rows=tm,
                              tiles_per_core=tiles_per_core),
            out_shape=jax.ShapeDtypeStruct((_NCORES, 2, d), jnp.float32),
            grid=(_NCORES, tiles_per_core),
            in_specs=[pl.BlockSpec((tm, d), x_map)],
            out_specs=pl.BlockSpec((1, 2, d), lambda c, j: (c, 0, 0)),
            compiler_params=_cparams(self.vmem_limit, "parallel", "arbitrary"),
        )(x)

        # Pass 2: tiled, pipelined FMA; fold of the tiny partials happens in-kernel.
        return pl.pallas_call(
            functools.partial(_bn_apply_kernel, n_rows=n),
            out_shape=jax.ShapeDtypeStruct((n, d), x.dtype),
            grid=(n_tiles,),
            in_specs=[
                pl.BlockSpec((tm, d), lambda i: (i, 0)),
                pl.BlockSpec((_NCORES, 2, d), lambda i: (0, 0, 0)),
                pl.BlockSpec((1, d), lambda i: (0, 0)),
                pl.BlockSpec((1, d), lambda i: (0, 0)),
            ],
            out_specs=pl.BlockSpec((tm, d), lambda i: (i, 0)),
            compiler_params=_cparams(self.vmem_limit, "parallel"),
        )(x, part, self.weight, self.bias)

    # ------------------------------------------------------------------ #
    def _graphnorm(self, graph, x):
        n, d = x.shape
        counts_py = [int(c) for c in graph.batch_num_nodes]  # concrete host sizes
        # TODO(synk): traced/dynamic batch_num_nodes is unsupported (the DGL module
        # also consumes a host-side Python list of per-graph node counts).
        assert sum(counts_py) == n
        num_graphs = len(counts_py)

        seg_ids = jnp.asarray(
            np.repeat(np.arange(num_graphs), counts_py).reshape(n, 1), jnp.int32)
        counts = jnp.asarray(
            np.asarray(counts_py, np.float32).reshape(num_graphs, 1))

        if self._small(x):
            # Fused fast path: one launch, stats + apply with x VMEM-resident.
            return pl.pallas_call(
                functools.partial(_gn_fused_kernel, num_graphs=num_graphs),
                out_shape=jax.ShapeDtypeStruct((n, d), x.dtype),
                grid=(1,),
                in_specs=[
                    pl.BlockSpec((n, d), lambda i: (0, 0)),
                    pl.BlockSpec((n, 1), lambda i: (0, 0)),
                    pl.BlockSpec((num_graphs, 1), lambda i: (0, 0)),
                    pl.BlockSpec((1, d), lambda i: (0, 0)),
                    pl.BlockSpec((1, d), lambda i: (0, 0)),
                    pl.BlockSpec((1, d), lambda i: (0, 0)),
                ],
                out_specs=pl.BlockSpec((n, d), lambda i: (0, 0)),
                compiler_params=_cparams(self.vmem_limit, "arbitrary"),
            )(x, seg_ids, counts, self.weight, self.bias, self.mean_scale)

        tm = _row_tile(n, d, x.dtype, self.vmem_limit, self.block_rows)
        n_tiles = pl.cdiv(n, tm)

        # Pass 1: streamed per-graph sum / sum-of-squares -> folded (2, B, D) table.
        ss = pl.pallas_call(
            functools.partial(_gn_stats_kernel, n_rows=n, tile_rows=tm,
                              num_graphs=num_graphs),
            out_shape=jax.ShapeDtypeStruct((2, num_graphs, d), jnp.float32),
            grid=(n_tiles,),
            in_specs=[
                pl.BlockSpec((tm, d), lambda i: (i, 0)),
                pl.BlockSpec((tm, 1), lambda i: (i, 0)),
                pl.BlockSpec((num_graphs, 1), lambda i: (0, 0)),
                pl.BlockSpec((1, d), lambda i: (0, 0)),
                pl.BlockSpec((1, d), lambda i: (0, 0)),
                pl.BlockSpec((1, d), lambda i: (0, 0)),
            ],
            out_specs=pl.BlockSpec((2, num_graphs, d), lambda i: (0, 0, 0)),
            compiler_params=_cparams(self.vmem_limit, "arbitrary"),
        )(x, seg_ids, counts, self.weight, self.bias, self.mean_scale)

        # Pass 2: pure read-x / write-out FMA; per-row scale/shift rebuilt in-kernel.
        return pl.pallas_call(
            functools.partial(_gn_apply_kernel, num_graphs=num_graphs),
            out_shape=jax.ShapeDtypeStruct((n, d), x.dtype),
            grid=(n_tiles,),
            in_specs=[
                pl.BlockSpec((tm, d), lambda i: (i, 0)),
                pl.BlockSpec((tm, 1), lambda i: (i, 0)),
                pl.BlockSpec((2, num_graphs, d), lambda i: (0, 0, 0)),
            ],
            out_specs=pl.BlockSpec((tm, d), lambda i: (i, 0)),
            compiler_params=_cparams(self.vmem_limit, "parallel"),
        )(x, seg_ids, ss)


# ----------------------------------------------------------------------------
# Pure-JAX references
# ----------------------------------------------------------------------------

def layernorm_ref(x, w, b):
    x = x.astype(jnp.float32)
    mean = jnp.mean(x, axis=-1, keepdims=True)
    var = jnp.mean((x - mean) ** 2, axis=-1, keepdims=True)
    return (x - mean) * jax.lax.rsqrt(var + 1e-5) * w + b


def batchnorm_ref(x, w, b):
    x = x.astype(jnp.float32)
    mean = jnp.mean(x, axis=0, keepdims=True)
    var = jnp.mean((x - mean) ** 2, axis=0, keepdims=True)
    return (x - mean) * jax.lax.rsqrt(var + 1e-5) * w + b


def graphnorm_ref(x, batch_list, weight, bias, mean_scale):
    x = x.astype(jnp.float32)
    nb = len(batch_list)
    counts = jnp.asarray(batch_list, jnp.float32)
    seg_ids = jnp.asarray(np.repeat(np.arange(nb), batch_list), jnp.int32)
    mean = jax.ops.segment_sum(x, seg_ids, num_segments=nb) / counts[:, None]
    sub = x - mean[seg_ids] * mean_scale
    var = jax.ops.segment_sum(sub * sub, seg_ids, num_segments=nb) / counts[:, None]
    std = jnp.sqrt(var + 1e-6)
    return weight * sub / std[seg_ids] + bias


if __name__ == "__main__":
    hidden_dim = 128                    # lane-dense feature dim
    batch_num_nodes = [72, 128]         # two graphs, 200 nodes -> partial tiles exercised
    num_nodes = sum(batch_num_nodes)
    graph = Graph(batch_num_nodes)

    key = jax.random.PRNGKey(0)
    kx, kw, kb, km = jax.random.split(key, 4)
    x = jax.random.normal(kx, (num_nodes, hidden_dim), dtype=jnp.float32)

    # Non-trivial affine params so the parameter math is actually exercised.
    w = 1.0 + 0.1 * jax.random.normal(kw, (1, hidden_dim), jnp.float32)
    b = 0.1 * jax.random.normal(kb, (1, hidden_dim), jnp.float32)
    ms = 1.0 + 0.1 * jax.random.normal(km, (1, hidden_dim), jnp.float32)

    ref_ln = layernorm_ref(x, w, b)
    ref_bn = batchnorm_ref(x, w, b)
    ref_gn = graphnorm_ref(x, batch_num_nodes, w, b, ms)

    # First pass: default config (fused fast paths / single-tile).
    # Second pass: small row tiles + fast path disabled -> exercise the general
    # multi-tile streaming paths (incl. partial last tile and megacore BN split).
    for kwargs in ({}, {"block_rows": 64, "small_fast_path": False}):
        ln = NormLayer(hidden_dim, "layernorm", **kwargs)
        ln.weight, ln.bias = w, b
        out_ln = jax.block_until_ready(ln(graph, x))
        assert out_ln.shape == x.shape and out_ln.dtype == x.dtype
        assert jnp.allclose(out_ln, ref_ln, atol=1e-3, rtol=1e-3), "layernorm mismatch"

        bn = NormLayer(hidden_dim, "batchnorm", **kwargs)
        bn.weight, bn.bias = w, b
        out_bn = jax.block_until_ready(bn(graph, x))
        assert jnp.allclose(out_bn, ref_bn, atol=1e-3, rtol=1e-3), "batchnorm mismatch"

        gn = NormLayer(hidden_dim, "graphnorm", **kwargs)
        gn.weight, gn.bias, gn.mean_scale = w, b, ms
        out_gn = jax.block_until_ready(gn(graph, x))
        assert jnp.allclose(out_gn, ref_gn, atol=1e-3, rtol=1e-3), "graphnorm mismatch"

    # bf16 input stays bf16 through the DMA; stats are computed in f32 in-kernel.
    ln = NormLayer(hidden_dim, "layernorm")
    ln.weight, ln.bias = w, b
    out_bf16 = jax.block_until_ready(ln(graph, x.astype(jnp.bfloat16)))
    assert out_bf16.dtype == jnp.bfloat16
    assert jnp.allclose(out_bf16.astype(jnp.float32), ref_ln, atol=1e-1, rtol=1e-1)

    print("KERNEL_OK")
</pallas_src>

<mosaic_0001>
module attributes {stable_mosaic.version = 11 : i64} {
  func.func @_layernorm_kernel(%arg0: i32, %arg1: memref<200x128xf32, #tpu.memory_space<vmem>>, %arg2: memref<1x128xf32, #tpu.memory_space<vmem>>, %arg3: memref<1x128xf32, #tpu.memory_space<vmem>>, %arg4: memref<200x128xf32, #tpu.memory_space<vmem>>) attributes {dimension_semantics = [#tpu.dimension_semantics<parallel>], iteration_bounds = array<i64: 1>, scalar_prefetch = 0 : i64, scratch_operands = 0 : i64, tpu.core_type = #tpu.core_type<tc>, window_params = [{transform_indices = @transform_0, window_bounds = array<i64: 200, 128>}, {pipeline_mode = #tpu.pipeline_mode<synchronous>, transform_indices = @transform_1, window_bounds = array<i64: 1, 128>}, {pipeline_mode = #tpu.pipeline_mode<synchronous>, transform_indices = @transform_2, window_bounds = array<i64: 1, 128>}, {transform_indices = @transform_3, window_bounds = array<i64: 200, 128>}]} {
    %c0 = arith.constant 0 : index
    %c0_0 = arith.constant 0 : index
    %0 = vector.load %arg1[%c0, %c0_0] : memref<200x128xf32, #tpu.memory_space<vmem>>, vector<200x128xf32>
    %cst = arith.constant dense<0.000000e+00> : vector<200xf32>
    %1 = vector.multi_reduction <add>, %0, %cst [1] : vector<200x128xf32> to vector<200xf32>
    %2 = vector.shape_cast %1 : vector<200xf32> to vector<200x1xf32>
    %cst_1 = arith.constant 1.280000e+02 : f32
    %3 = vector.broadcast %cst_1 : f32 to vector<200x1xf32>
    %4 = arith.divf %2, %3 : vector<200x1xf32>
    %5 = vector.broadcast %4 : vector<200x1xf32> to vector<200x128xf32>
    %6 = arith.subf %0, %5 : vector<200x128xf32>
    %7 = arith.mulf %6, %6 : vector<200x128xf32>
    %cst_2 = arith.constant dense<0.000000e+00> : vector<200xf32>
    %8 = vector.multi_reduction <add>, %7, %cst_2 [1] : vector<200x128xf32> to vector<200xf32>
    %9 = vector.shape_cast %8 : vector<200xf32> to vector<200x1xf32>
    %cst_3 = arith.constant 1.280000e+02 : f32
    %10 = vector.broadcast %cst_3 : f32 to vector<200x1xf32>
    %11 = arith.divf %9, %10 : vector<200x1xf32>
    %cst_4 = arith.constant 9.99999974E-6 : f32
    %12 = vector.broadcast %cst_4 : f32 to vector<200x1xf32>
    %13 = arith.addf %11, %12 : vector<200x1xf32>
    %14 = math.rsqrt %13 : vector<200x1xf32>
    %15 = vector.broadcast %14 : vector<200x1xf32> to vector<200x128xf32>
    %16 = arith.mulf %6, %15 : vector<200x128xf32>
    %c0_5 = arith.constant 0 : index
    %c0_6 = arith.constant 0 : index
    %17 = vector.load %arg2[%c0_5, %c0_6] : memref<1x128xf32, #tpu.memory_space<vmem>>, vector<1x128xf32>
    %18 = vector.broadcast %17 : vector<1x128xf32> to vector<200x128xf32>
    %19 = arith.mulf %16, %18 : vector<200x128xf32>
    %c0_7 = arith.constant 0 : index
    %c0_8 = arith.constant 0 : index
    %20 = vector.load %arg3[%c0_7, %c0_8] : memref<1x128xf32, #tpu.memory_space<vmem>>, vector<1x128xf32>
    %21 = vector.broadcast %20 : vector<1x128xf32> to vector<200x128xf32>
    %22 = arith.addf %19, %21 : vector<200x128xf32>
    %c0_9 = arith.constant 0 : index
    %c0_10 = arith.constant 0 : index
    %23 = vector.load %arg4[%c0_9, %c0_10] : memref<200x128xf32, #tpu.memory_space<vmem>>, vector<200x128xf32>
    tpu.vector_store %arg4[%c0_9, %c0_10], %22 {strides = array<i32>} : memref<200x128xf32, #tpu.memory_space<vmem>>, vector<200x128xf32>,
    return
  }
  func.func @transform_0(%arg0: i32) -> (i32, i32) {
    %c0_i32 = arith.constant 0 : i32
    %c0_i32_0 = arith.constant 0 : i32
    return %arg0, %c0_i32 : i32, i32
  }
  func.func @transform_1(%arg0: i32) -> (i32, i32) {
    %c0_i32 = arith.constant 0 : i32
    %c0_i32_0 = arith.constant 0 : i32
    %c0_i32_1 = arith.constant 0 : i32
    return %c0_i32, %c0_i32_0 : i32, i32
  }
  func.func @transform_2(%arg0: i32) -> (i32, i32) {
    %c0_i32 = arith.constant 0 : i32
    %c0_i32_0 = arith.constant 0 : i32
    %c0_i32_1 = arith.constant 0 : i32
    return %c0_i32, %c0_i32_0 : i32, i32
  }
  func.func @transform_3(%arg0: i32) -> (i32, i32) {
    %c0_i32 = arith.constant 0 : i32
    %c0_i32_0 = arith.constant 0 : i32
    return %arg0, %c0_i32 : i32, i32
  }
}

</mosaic_0001>

<bundles_post_ra>
// kernel: tpu_custom_call.1
= control target key start
LH: loop header
LB: loop body
LE: loop exit
PB: predicated region body
PF: predicated region fallthrough
CT: control target
= control target key end

     0   :  { %8 = vsyncpa [#allocation3], 0  ;;  %s837_s0 = inlined_call_operand.hbm [shape: f32[200,128], index: 0, kind: input, shape index: {}]   ;;  %s838_s1 = inlined_call_operand.vmem [shape: f32[1,128], index: 1, kind: input, shape index: {}]   ;;  %s839_s2 = inlined_call_operand.vmem [shape: f32[1,128], index: 2, kind: input, shape index: {}]   ;;  %s840_s3 = inlined_call_operand.hbm [shape: f32[200,128], index: 3, kind: output, shape index: {}]  }
   0x1   :  { %9 = vsyncpa [#allocation4], 0  ;;  %s536_s12 = smov [#allocation2]  }
   0x2   :  { %s15_s13 = sshll.u32 %s536_s12, 4  ;;  %s16_s13 = int_to_ptr.vmem [resolvable:$true] %s15_s13 }
   0x3   :  { %s500_s14 = scalar_lea.vmem %s16_s13, 3200  ;;  %p505_p1 = scmp.lt.s32.totalorder %s16_s13, %s16_s13 }
   0x4   :  { %p501_p0 = scmp.ne.s32.totalorder %s16_s13, %s500_s14  ;;  %p506_p2 = scmp.lt.s32.totalorder %s500_s14, %s500_s14 }
   0x6   :  { %p507_p3 = por %p506_p2, %p505_p1 }
   0x8   :  { %p508_p4 = pnand %p507_p3, %p501_p0 }
   0xa   :  { %511 = shalt.err (!%p508_p4)
}
   0xb   :  { %s537_s15 = smov 128   ;;  %s538_s16 = smov 8  }
   0xc   :  { %21 = dma.hbm_to_vmem [thread:$0]  %s837_s0, 3200, %s16_s13, [#allocation3], %s537_s15, %s537_s15, %s538_s16  }
   0xd   :  { %532 = dma.done.wait [#allocation3], 3200  }
   0xe   :  { %533 = vsyncadd [#allocation3], 4294964096  ;;  %v29_v0 = vld [vmem:[#allocation2] sm:$0xff]  ;;  %v31_v1 = vld [vmem:[#allocation2 + $0x10] sm:$0xff] }
   0xf   :  { %54 = vadd.xlane.f32.xlu0 %v29_v0  ;;  %58 = vadd.xlane.f32.xlu1 %v31_v1  ;;  %v30_v2 = vld [vmem:[#allocation2 + $0x8] sm:$0xff]  ;;  %v32_v3 = vld [vmem:[#allocation2 + $0x18] sm:$0xff]  ;;  %v33_v4 = vld [vmem:[#allocation2 + $0x20] sm:$0xff] }
  0x10   :  { %v566_v5 = vld [vmem:[#allocation2 + $0x28] sm:$0xff]  ;;  %v569_v6 = vld [vmem:[#allocation2 + $0x30] sm:$0xff]  ;;  %v571_v7 = vld [vmem:[#allocation2 + $0x38] sm:$0xff] }
  0x11   :  { %v575_v8 = vld [vmem:[#allocation2 + $0x40] sm:$0xff]  ;;  %v577_v9 = vld [vmem:[#allocation2 + $0x48] sm:$0xff]  ;;  %v581_v10 = vld [vmem:[#allocation2 + $0x50] sm:$0xff] }
  0x12   :  { %v583_v11 = vld [vmem:[#allocation2 + $0x58] sm:$0xff]  ;;  %v587_v12 = vld [vmem:[#allocation2 + $0x60] sm:$0xff]  ;;  %v589_v13 = vld [vmem:[#allocation2 + $0x68] sm:$0xff] }
  0x13   :  { %56 = vadd.xlane.f32.xlu0 %v30_v2  ;;  %60 = vadd.xlane.f32.xlu1 %v32_v3  ;;  %v593_v14 = vld [vmem:[#allocation2 + $0x70] sm:$0xff]  ;;  %v595_v15 = vld [vmem:[#allocation2 + $0x78] sm:$0xff]  ;;  %v599_v16 = vld [vmem:[#allocation2 + $0x80] sm:$0xff] }
  0x14   :  { %v601_v17 = vld [vmem:[#allocation2 + $0x88] sm:$0xff]  ;;  %v605_v18 = vld [vmem:[#allocation2 + $0x90] sm:$0xff]  ;;  %v607_v19 = vld [vmem:[#allocation2 + $0x98] sm:$0xff] }
  0x15   :  { %v611_v20 = vld [vmem:[#allocation2 + $0xa0] sm:$0xff]  ;;  %v613_v21 = vld [vmem:[#allocation2 + $0xa8] sm:$0xff]  ;;  %v617_v22 = vld [vmem:[#allocation2 + $0xb0] sm:$0xff] }
  0x16   :  { %v619_v23 = vld [vmem:[#allocation2 + $0xb8] sm:$0xff]  ;;  %v623_v24 = vld [vmem:[#allocation2 + $0xc0] sm:$0xff] }
  0x17   :  { %62 = vadd.xlane.f32.xlu0 %v33_v4  ;;  %64 = vadd.xlane.f32.xlu1 %v566_v5 }
  0x1b   :  { %66 = vadd.xlane.f32.xlu0 %v569_v6  ;;  %68 = vadd.xlane.f32.xlu1 %v571_v7 }
  0x1f   :  { %70 = vadd.xlane.f32.xlu0 %v575_v8  ;;  %72 = vadd.xlane.f32.xlu1 %v577_v9 }
  0x23   :  { %74 = vadd.xlane.f32.xlu0 %v581_v10  ;;  %76 = vadd.xlane.f32.xlu1 %v583_v11 }
  0x27   :  { %78 = vadd.xlane.f32.xlu0 %v587_v12  ;;  %80 = vadd.xlane.f32.xlu1 %v589_v13 }
  0x2b   :  { %82 = vadd.xlane.f32.xlu0 %v593_v14  ;;  %84 = vadd.xlane.f32.xlu1 %v595_v15 }
  0x2f   :  { %86 = vadd.xlane.f32.xlu0 %v599_v16  ;;  %88 = vadd.xlane.f32.xlu1 %v601_v17 }
  0x33   :  { %90 = vadd.xlane.f32.xlu0 %v605_v18  ;;  %92 = vadd.xlane.f32.xlu1 %v607_v19 }
  0x37   :  { %94 = vadd.xlane.f32.xlu0 %v611_v20  ;;  %96 = vadd.xlane.f32.xlu1 %v613_v21 }
  0x3b   :  { %98 = vadd.xlane.f32.xlu0 %v617_v22  ;;  %100 = vadd.xlane.f32.xlu1 %v619_v23 }
  0x3f   :  { %102 = vadd.xlane.f32.xlu0 %v623_v24 }
  0x98   :  { %v55_v25 = vpop.xlane.xlu0 %54  ;;  %v59_v26 = vpop.xlane.xlu1 %58 }
  0x99   :  { %v105_v27 = vmul.f32 0.0078125, %v55_v25  ;;  %v107_v28 = vmul.f32 0.0078125, %v59_v26 }
  0x9b   :  { %v626_v29 = vsub.f32 %v29_v0, %v105_v27  ;;  %v628_v30 = vsub.f32 %v31_v1, %v107_v28 }
  0x9c   :  { %v57_v31 = vpop.xlane.xlu0 %56  ;;  %v61_v32 = vpop.xlane.xlu1 %60 }
  0x9d   :  { %v106_v33 = vmul.f32 0.0078125, %v57_v31  ;;  %v155_v34 = vmul.f32 %v626_v29, %v626_v29  ;;  %v108_v35 = vmul.f32 0.0078125, %v61_v32  ;;  %v157_v38 = vmul.f32 %v628_v30, %v628_v30 }
  0x9f   :  { %v632_v36 = vsub.f32 %v30_v2, %v106_v33  ;;  %180 = vadd.xlane.f32.xlu1 %v155_v34  ;;  %v634_v37 = vsub.f32 %v32_v3, %v108_v35 }
  0xa0   :  { %v63_v39 = vpop.xlane.xlu0 %62  ;;  %v65_v40 = vpop.xlane.xlu1 %64 }
  0xa1   :  { %v109_v41 = vmul.f32 0.0078125, %v63_v39  ;;  %v156_v42 = vmul.f32 %v632_v36, %v632_v36  ;;  %v110_v43 = vmul.f32 0.0078125, %v65_v40  ;;  %v158_v46 = vmul.f32 %v634_v37, %v634_v37 }
  0xa3   :  { %v640_v44 = vsub.f32 %v33_v4, %v109_v41  ;;  %184 = vadd.xlane.f32.xlu1 %v157_v38  ;;  %182 = vadd.xlane.f32.xlu0 %v156_v42  ;;  %v643_v45 = vsub.f32 %v566_v5, %v110_v43 }
  0xa4   :  { %v67_v47 = vpop.xlane.xlu0 %66  ;;  %v69_v48 = vpop.xlane.xlu1 %68 }
  0xa5   :  { %v111_v49 = vmul.f32 0.0078125, %v67_v47  ;;  %v159_v50 = vmul.f32 %v640_v44, %v640_v44  ;;  %v112_v51 = vmul.f32 0.0078125, %v69_v48  ;;  %v160_v54 = vmul.f32 %v643_v45, %v643_v45 }
  0xa7   :  { %v650_v52 = vsub.f32 %v569_v6, %v111_v49  ;;  %186 = vadd.xlane.f32.xlu0 %v158_v46  ;;  %188 = vadd.xlane.f32.xlu1 %v159_v50  ;;  %v653_v53 = vsub.f32 %v571_v7, %v112_v51 }
  0xa8   :  { %v71_v55 = vpop.xlane.xlu0 %70  ;;  %v73_v56 = vpop.xlane.xlu1 %72 }
  0xa9   :  { %v113_v57 = vmul.f32 0.0078125, %v71_v55  ;;  %v161_v58 = vmul.f32 %v650_v52, %v650_v52  ;;  %v114_v59 = vmul.f32 0.0078125, %v73_v56  ;;  %v162_v62 = vmul.f32 %v653_v53, %v653_v53 }
  0xab   :  { %v660_v60 = vsub.f32 %v575_v8, %v113_v57  ;;  %190 = vadd.xlane.f32.xlu0 %v160_v54  ;;  %192 = vadd.xlane.f32.xlu1 %v161_v58  ;;  %v663_v61 = vsub.f32 %v577_v9, %v114_v59 }
  0xac   :  { %v75_v63 = vpop.xlane.xlu0 %74  ;;  %v77_v0 = vpop.xlane.xlu1 %76 }
  0xad   :  { %v115_v1 = vmul.f32 0.0078125, %v75_v63  ;;  %v163_v2 = vmul.f32 %v660_v60, %v660_v60  ;;  %v116_v3 = vmul.f32 0.0078125, %v77_v0  ;;  %v164_v6 = vmul.f32 %v663_v61, %v663_v61 }
  0xaf   :  { %v670_v4 = vsub.f32 %v581_v10, %v115_v1  ;;  %194 = vadd.xlane.f32.xlu0 %v162_v62  ;;  %196 = vadd.xlane.f32.xlu1 %v163_v2  ;;  %v673_v5 = vsub.f32 %v583_v11, %v116_v3 }
  0xb0   :  { %v79_v7 = vpop.xlane.xlu0 %78  ;;  %v81_v8 = vpop.xlane.xlu1 %80 }
  0xb1   :  { %v117_v9 = vmul.f32 0.0078125, %v79_v7  ;;  %v165_v25 = vmul.f32 %v670_v4, %v670_v4  ;;  %v118_v26 = vmul.f32 0.0078125, %v81_v8  ;;  %v166_v11 = vmul.f32 %v673_v5, %v673_v5 }
  0xb3   :  { %v680_v27 = vsub.f32 %v587_v12, %v117_v9  ;;  %198 = vadd.xlane.f32.xlu0 %v164_v6  ;;  %200 = vadd.xlane.f32.xlu1 %v165_v25  ;;  %v683_v10 = vsub.f32 %v589_v13, %v118_v26 }
  0xb4   :  { %v83_v28 = vpop.xlane.xlu0 %82  ;;  %v85_v31 = vpop.xlane.xlu1 %84 }
  0xb5   :  { %v119_v32 = vmul.f32 0.0078125, %v83_v28  ;;  %v167_v33 = vmul.f32 %v680_v27, %v680_v27  ;;  %v120_v34 = vmul.f32 0.0078125, %v85_v31  ;;  %v168_v13 = vmul.f32 %v683_v10, %v683_v10 }
  0xb7   :  { %v690_v35 = vsub.f32 %v593_v14, %v119_v32  ;;  %202 = vadd.xlane.f32.xlu0 %v166_v11  ;;  %204 = vadd.xlane.f32.xlu1 %v167_v33  ;;  %v693_v12 = vsub.f32 %v595_v15, %v120_v34 }
  0xb8   :  { %v87_v38 = vpop.xlane.xlu0 %86  ;;  %v89_v39 = vpop.xlane.xlu1 %88 }
  0xb9   :  { %v121_v40 = vmul.f32 0.0078125, %v87_v38  ;;  %v169_v41 = vmul.f32 %v690_v35, %v690_v35  ;;  %v122_v42 = vmul.f32 0.0078125, %v89_v39  ;;  %v170_v15 = vmul.f32 %v693_v12, %v693_v12 }
  0xbb   :  { %v700_v43 = vsub.f32 %v599_v16, %v121_v40  ;;  %206 = vadd.xlane.f32.xlu0 %v168_v13  ;;  %208 = vadd.xlane.f32.xlu1 %v169_v41  ;;  %v703_v14 = vsub.f32 %v601_v17, %v122_v42 }
  0xbc   :  { %v91_v46 = vpop.xlane.xlu0 %90  ;;  %v93_v47 = vpop.xlane.xlu1 %92 }
  0xbd   :  { %v123_v48 = vmul.f32 0.0078125, %v91_v46  ;;  %v171_v49 = vmul.f32 %v700_v43, %v700_v43  ;;  %v124_v50 = vmul.f32 0.0078125, %v93_v47  ;;  %v172_v17 = vmul.f32 %v703_v14, %v703_v14 }
  0xbf   :  { %v710_v51 = vsub.f32 %v605_v18, %v123_v48  ;;  %210 = vadd.xlane.f32.xlu0 %v170_v15  ;;  %212 = vadd.xlane.f32.xlu1 %v171_v49  ;;  %v713_v16 = vsub.f32 %v607_v19, %v124_v50 }
  0xc0   :  { %v95_v54 = vpop.xlane.xlu0 %94  ;;  %v97_v55 = vpop.xlane.xlu1 %96 }
  0xc1   :  { %v125_v56 = vmul.f32 0.0078125, %v95_v54  ;;  %v173_v57 = vmul.f32 %v710_v51, %v710_v51  ;;  %v126_v58 = vmul.f32 0.0078125, %v97_v55  ;;  %v174_v19 = vmul.f32 %v713_v16, %v713_v16 }
  0xc3   :  { %v720_v59 = vsub.f32 %v611_v20, %v125_v56  ;;  %214 = vadd.xlane.f32.xlu0 %v172_v17  ;;  %216 = vadd.xlane.f32.xlu1 %v173_v57  ;;  %v723_v18 = vsub.f32 %v613_v21, %v126_v58  ;;  %v749_v58 = vld [vmem:[%s838_s1] ss:$0 sm:$0xff]  ;;  %s539_s1 = smov [#allocation5]  }
  0xc4   :  { %v99_v62 = vpop.xlane.xlu0 %98  ;;  %v101_v63 = vpop.xlane.xlu1 %100 }
  0xc5   :  { %v127_v0 = vmul.f32 0.0078125, %v99_v62  ;;  %v175_v1 = vmul.f32 %v720_v59, %v720_v59  ;;  %v128_v2 = vmul.f32 0.0078125, %v101_v63  ;;  %v176_v21 = vmul.f32 %v723_v18, %v723_v18 }
  0xc7   :  { %v730_v3 = vsub.f32 %v617_v22, %v127_v0  ;;  %218 = vadd.xlane.f32.xlu0 %v174_v19  ;;  %220 = vadd.xlane.f32.xlu1 %v175_v1  ;;  %v733_v20 = vsub.f32 %v619_v23, %v128_v2  ;;  %v755_v0 = vld [vmem:[%s839_s2] ss:$0 sm:$0xff]  ;;  %s424_s2 = sshll.u32 %s539_s1, 4  ;;  %s425_s2 = int_to_ptr.vmem [resolvable:$true] %s424_s2 }
  0xc8   :  { %v103_v6 = vpop.xlane.xlu0 %102  ;;  %s512_s22 = scalar_lea.vmem %s425_s2, 3200  ;;  %p517_p6 = scmp.lt.s32.totalorder %s425_s2, %s425_s2 }
  0xc9   :  { %v129_v7 = vmul.f32 0.0078125, %v103_v6  ;;  %v177_v8 = vmul.f32 %v730_v3, %v730_v3  ;;  %v178_v22 = vmul.f32 %v733_v20, %v733_v20  ;;  %p513_p5 = scmp.ne.s32.totalorder %s425_s2, %s512_s22  ;;  %p518_p7 = scmp.lt.s32.totalorder %s512_s22, %s512_s22 }
  0xcb   :  { %v740_v9 = vsub.f32 %v623_v24, %v129_v7  ;;  %222 = vadd.xlane.f32.xlu0 %v176_v21  ;;  %224 = vadd.xlane.f32.xlu1 %v177_v8  ;;  %p519_p8 = por %p518_p7, %p517_p6 }
  0xcd   :  { %v179_v23 = vmul.f32 %v740_v9, %v740_v9  ;;  %p520_p9 = pnand %p519_p8, %p513_p5 }
  0xcf   :  { %226 = vadd.xlane.f32.xlu0 %v178_v22  ;;  %228 = vadd.xlane.f32.xlu1 %v179_v23 }
 0x128   :  { %v181_v25 = vpop.xlane.xlu1 %180 }
 0x129   :  { %v230_v26 = vmul.f32 0.0078125, %v181_v25 }
 0x12b   :  { %v255_v11 = vadd.f32 1e-05, %v230_v26 }
 0x12c   :  { %v185_v28 = vpop.xlane.xlu1 %184  ;;  %v183_v31 = vpop.xlane.xlu0 %182 }
 0x12d   :  { %442 = vrsqrt.f32 %v255_v11  ;;  %v232_v32 = vmul.f32 0.0078125, %v185_v28  ;;  %v231_v33 = vmul.f32 0.0078125, %v183_v31 }
 0x12f   :  { %v257_v24 = vadd.f32 1e-05, %v232_v32  ;;  %v256_v34 = vadd.f32 1e-05, %v231_v33 }
 0x130   :  { %v189_v13 = vpop.xlane.xlu1 %188  ;;  %v187_v38 = vpop.xlane.xlu0 %186 }
 0x131   :  { %444 = vrsqrt.f32 %v257_v24  ;;  %v234_v39 = vmul.f32 0.0078125, %v189_v13  ;;  %v233_v40 = vmul.f32 0.0078125, %v187_v38 }
 0x132   :  { %446 = vrsqrt.f32 %v256_v34 }
 0x133   :  { %v259_v41 = vadd.f32 1e-05, %v234_v39  ;;  %v258_v42 = vadd.f32 1e-05, %v233_v40 }
 0x134   :  { %v193_v15 = vpop.xlane.xlu1 %192  ;;  %v191_v46 = vpop.xlane.xlu0 %190 }
 0x135   :  { %448 = vrsqrt.f32 %v259_v41  ;;  %v236_v47 = vmul.f32 0.0078125, %v193_v15  ;;  %v235_v48 = vmul.f32 0.0078125, %v191_v46 }
 0x136   :  { %450 = vrsqrt.f32 %v258_v42 }
 0x137   :  { %v261_v49 = vadd.f32 1e-05, %v236_v47  ;;  %v260_v50 = vadd.f32 1e-05, %v235_v48 }
 0x138   :  { %v197_v17 = vpop.xlane.xlu1 %196  ;;  %v195_v54 = vpop.xlane.xlu0 %194 }
 0x139   :  { %452 = vrsqrt.f32 %v261_v49  ;;  %v238_v55 = vmul.f32 0.0078125, %v197_v17  ;;  %v237_v56 = vmul.f32 0.0078125, %v195_v54 }
 0x13a   :  { %v443_v57 = vpop.eup %442  ;;  %454 = vrsqrt.f32 %v260_v50 }
 0x13b   :  { %v305_v19 = vmul.f32 %v443_v57, %v626_v29  ;;  %v263_v62 = vadd.f32 1e-05, %v238_v55  ;;  %v262_v63 = vadd.f32 1e-05, %v237_v56 }
 0x13c   :  { %v201_v1 = vpop.xlane.xlu1 %200  ;;  %v199_v2 = vpop.xlane.xlu0 %198 }
 0x13d   :  { %v337_v21 = vmul.f32 %v749_v58, %v305_v19  ;;  %456 = vrsqrt.f32 %v263_v62  ;;  %v240_v6 = vmul.f32 0.0078125, %v201_v1  ;;  %v239_v7 = vmul.f32 0.0078125, %v199_v2 }
 0x13e   :  { %v445_v8 = vpop.eup %444  ;;  %458 = vrsqrt.f32 %v262_v63 }
 0x13f   :  { %v447_v22 = vpop.eup %446  ;;  %v369_v23 = vadd.f32 %v755_v0, %v337_v21  ;;  %v307_v29 = vmul.f32 %v445_v8, %v628_v30  ;;  %v265_v25 = vadd.f32 1e-05, %v240_v6  ;;  %v264_v26 = vadd.f32 1e-05, %v239_v7 }
 0x140   :  { %v306_v11 = vmul.f32 %v447_v22, %v632_v36  ;;  %v205_v28 = vpop.xlane.xlu1 %204  ;;  %v203_v31 = vpop.xlane.xlu0 %202 }
 0x141   :  { %394 = vst [vmem:[#allocation5] sm:$0xff] %v369_v23  ;;  %v339_v32 = vmul.f32 %v749_v58, %v307_v29  ;;  %460 = vrsqrt.f32 %v265_v25  ;;  %v242_v33 = vmul.f32 0.0078125, %v205_v28  ;;  %v241_v24 = vmul.f32 0.0078125, %v203_v31 }
 0x142   :  { %v449_v34 = vpop.eup %448  ;;  %v338_v13 = vmul.f32 %v749_v58, %v306_v11  ;;  %462 = vrsqrt.f32 %v264_v26 }
 0x143   :  { %v451_v38 = vpop.eup %450  ;;  %v371_v39 = vadd.f32 %v755_v0, %v339_v32  ;;  %v309_v30 = vmul.f32 %v449_v34, %v640_v44  ;;  %v267_v40 = vadd.f32 1e-05, %v242_v33  ;;  %v266_v41 = vadd.f32 1e-05, %v241_v24 }
 0x144   :  { %v370_v36 = vadd.f32 %v755_v0, %v338_v13  ;;  %v308_v42 = vmul.f32 %v451_v38, %v634_v37  ;;  %v209_v15 = vpop.xlane.xlu1 %208  ;;  %v207_v46 = vpop.xlane.xlu0 %206 }
 0x145   :  { %396 = vst [vmem:[#allocation5 + $0x10] sm:$0xff] %v371_v39  ;;  %v341_v47 = vmul.f32 %v749_v58, %v309_v30  ;;  %464 = vrsqrt.f32 %v267_v40  ;;  %v244_v48 = vmul.f32 0.0078125, %v209_v15  ;;  %v243_v49 = vmul.f32 0.0078125, %v207_v46 }
 0x146   :  { %v453_v50 = vpop.eup %452  ;;  %395 = vst [vmem:[#allocation5 + $0x8] sm:$0xff] %v370_v36  ;;  %v340_v17 = vmul.f32 %v749_v58, %v308_v42  ;;  %466 = vrsqrt.f32 %v266_v41 }
 0x147   :  { %v455_v44 = vpop.eup %454  ;;  %v373_v54 = vadd.f32 %v755_v0, %v341_v47  ;;  %v311_v55 = vmul.f32 %v453_v50, %v650_v52  ;;  %v269_v56 = vadd.f32 1e-05, %v244_v48  ;;  %v268_v37 = vadd.f32 1e-05, %v243_v49 }
 0x148   :  { %v372_v57 = vadd.f32 %v755_v0, %v340_v17  ;;  %v310_v19 = vmul.f32 %v455_v44, %v643_v45  ;;  %v213_v62 = vpop.xlane.xlu1 %212  ;;  %v211_v63 = vpop.xlane.xlu0 %210 }
 0x149   :  { %398 = vst [vmem:[#allocation5 + $0x20] sm:$0xff] %v373_v54  ;;  %v343_v1 = vmul.f32 %v749_v58, %v311_v55  ;;  %468 = vrsqrt.f32 %v269_v56  ;;  %v246_v2 = vmul.f32 0.0078125, %v213_v62  ;;  %v245_v21 = vmul.f32 0.0078125, %v211_v63 }
 0x14a   :  { %v457_v6 = vpop.eup %456  ;;  %397 = vst [vmem:[#allocation5 + $0x18] sm:$0xff] %v372_v57  ;;  %v342_v7 = vmul.f32 %v749_v58, %v310_v19  ;;  %470 = vrsqrt.f32 %v268_v37 }
 0x14b   :  { %v459_v52 = vpop.eup %458  ;;  %v375_v8 = vadd.f32 %v755_v0, %v343_v1  ;;  %v313_v22 = vmul.f32 %v457_v6, %v660_v60  ;;  %v271_v23 = vadd.f32 1e-05, %v246_v2  ;;  %v270_v45 = vadd.f32 1e-05, %v245_v21 }
 0x14c   :  { %v374_v29 = vadd.f32 %v755_v0, %v342_v7  ;;  %v312_v25 = vmul.f32 %v459_v52, %v653_v53  ;;  %v217_v26 = vpop.xlane.xlu1 %216  ;;  %v215_v11 = vpop.xlane.xlu0 %214 }
 0x14d   :  { %400 = vst [vmem:[#allocation5 + $0x30] sm:$0xff] %v375_v8  ;;  %v345_v28 = vmul.f32 %v749_v58, %v313_v22  ;;  %472 = vrsqrt.f32 %v271_v23  ;;  %v248_v31 = vmul.f32 0.0078125, %v217_v26  ;;  %v247_v32 = vmul.f32 0.0078125, %v215_v11 }
 0x14e   :  { %v461_v33 = vpop.eup %460  ;;  %399 = vst [vmem:[#allocation5 + $0x28] sm:$0xff] %v374_v29  ;;  %v344_v24 = vmul.f32 %v749_v58, %v312_v25  ;;  %474 = vrsqrt.f32 %v270_v45 }
 0x14f   :  { %v463_v60 = vpop.eup %462  ;;  %v377_v34 = vadd.f32 %v755_v0, %v345_v28  ;;  %v315_v13 = vmul.f32 %v461_v33, %v670_v4  ;;  %v273_v38 = vadd.f32 1e-05, %v248_v31  ;;  %v272_v53 = vadd.f32 1e-05, %v247_v32 }
 0x150   :  { %v376_v39 = vadd.f32 %v755_v0, %v344_v24  ;;  %v314_v30 = vmul.f32 %v463_v60, %v663_v61  ;;  %v221_v40 = vpop.xlane.xlu1 %220  ;;  %v219_v41 = vpop.xlane.xlu0 %218 }
 0x151   :  { %402 = vst [vmem:[#allocation5 + $0x40] sm:$0xff] %v377_v34  ;;  %v347_v36 = vmul.f32 %v749_v58, %v315_v13  ;;  %476 = vrsqrt.f32 %v273_v38  ;;  %v250_v42 = vmul.f32 0.0078125, %v221_v40  ;;  %v249_v15 = vmul.f32 0.0078125, %v219_v41 }
 0x152   :  { %v465_v46 = vpop.eup %464  ;;  %401 = vst [vmem:[#allocation5 + $0x38] sm:$0xff] %v376_v39  ;;  %v346_v47 = vmul.f32 %v749_v58, %v314_v30  ;;  %478 = vrsqrt.f32 %v272_v53 }
 0x153   :  { %v467_v4 = vpop.eup %466  ;;  %v379_v48 = vadd.f32 %v755_v0, %v347_v36  ;;  %v317_v49 = vmul.f32 %v465_v46, %v680_v27  ;;  %v275_v50 = vadd.f32 1e-05, %v250_v42  ;;  %v274_v61 = vadd.f32 1e-05, %v249_v15 }
 0x154   :  { %v378_v17 = vadd.f32 %v755_v0, %v346_v47  ;;  %v316_v44 = vmul.f32 %v467_v4, %v673_v5  ;;  %v225_v54 = vpop.xlane.xlu1 %224  ;;  %v223_v55 = vpop.xlane.xlu0 %222 }
 0x155   :  { %404 = vst [vmem:[#allocation5 + $0x50] sm:$0xff] %v379_v48  ;;  %v349_v56 = vmul.f32 %v749_v58, %v317_v49  ;;  %480 = vrsqrt.f32 %v275_v50  ;;  %v252_v37 = vmul.f32 0.0078125, %v225_v54  ;;  %v251_v57 = vmul.f32 0.0078125, %v223_v55 }
 0x156   :  { %v469_v19 = vpop.eup %468  ;;  %403 = vst [vmem:[#allocation5 + $0x48] sm:$0xff] %v378_v17  ;;  %v348_v62 = vmul.f32 %v749_v58, %v316_v44  ;;  %482 = vrsqrt.f32 %v274_v61 }
 0x157   :  { %v471_v27 = vpop.eup %470  ;;  %v381_v63 = vadd.f32 %v755_v0, %v349_v56  ;;  %v319_v1 = vmul.f32 %v469_v19, %v690_v35  ;;  %v277_v2 = vadd.f32 1e-05, %v252_v37  ;;  %v276_v5 = vadd.f32 1e-05, %v251_v57 }
 0x158   :  { %v380_v21 = vadd.f32 %v755_v0, %v348_v62  ;;  %v318_v6 = vmul.f32 %v471_v27, %v683_v10  ;;  %v229_v7 = vpop.xlane.xlu1 %228  ;;  %v227_v52 = vpop.xlane.xlu0 %226 }
 0x159   :  { %406 = vst [vmem:[#allocation5 + $0x60] sm:$0xff] %v381_v63  ;;  %v351_v8 = vmul.f32 %v749_v58, %v319_v1  ;;  %484 = vrsqrt.f32 %v277_v2  ;;  %v254_v22 = vmul.f32 0.0078125, %v229_v7  ;;  %v253_v23 = vmul.f32 0.0078125, %v227_v52 }
 0x15a   :  { %v473_v45 = vpop.eup %472  ;;  %405 = vst [vmem:[#allocation5 + $0x58] sm:$0xff] %v380_v21  ;;  %v350_v29 = vmul.f32 %v749_v58, %v318_v6  ;;  %486 = vrsqrt.f32 %v276_v5 }
 0x15b   :  { %v475_v35 = vpop.eup %474  ;;  %v383_v25 = vadd.f32 %v755_v0, %v351_v8  ;;  %v321_v26 = vmul.f32 %v473_v45, %v700_v43  ;;  %v279_v11 = vadd.f32 1e-05, %v254_v22  ;;  %v278_v10 = vadd.f32 1e-05, %v253_v23 }
 0x15c   :  { %v382_v28 = vadd.f32 %v755_v0, %v350_v29  ;;  %v320_v31 = vmul.f32 %v475_v35, %v693_v12 }
 0x15d   :  { %408 = vst [vmem:[#allocation5 + $0x70] sm:$0xff] %v383_v25  ;;  %v353_v32 = vmul.f32 %v749_v58, %v321_v26  ;;  %488 = vrsqrt.f32 %v279_v11 }
 0x15e   :  { %v477_v33 = vpop.eup %476  ;;  %407 = vst [vmem:[#allocation5 + $0x68] sm:$0xff] %v382_v28  ;;  %v352_v24 = vmul.f32 %v749_v58, %v320_v31  ;;  %490 = vrsqrt.f32 %v278_v10 }
 0x15f   :  { %v479_v60 = vpop.eup %478  ;;  %v385_v34 = vadd.f32 %v755_v0, %v353_v32  ;;  %v323_v43 = vmul.f32 %v477_v33, %v710_v51 }
 0x160   :  { %v384_v13 = vadd.f32 %v755_v0, %v352_v24  ;;  %v322_v38 = vmul.f32 %v479_v60, %v703_v14 }
 0x161   :  { %410 = vst [vmem:[#allocation5 + $0x80] sm:$0xff] %v385_v34  ;;  %v355_v12 = vmul.f32 %v749_v58, %v323_v43 }
 0x162   :  { %v481_v53 = vpop.eup %480  ;;  %409 = vst [vmem:[#allocation5 + $0x78] sm:$0xff] %v384_v13  ;;  %v354_v39 = vmul.f32 %v749_v58, %v322_v38 }
 0x163   :  { %v483_v30 = vpop.eup %482  ;;  %v387_v40 = vadd.f32 %v755_v0, %v355_v12  ;;  %v325_v41 = vmul.f32 %v481_v53, %v720_v59 }
 0x164   :  { %v386_v36 = vadd.f32 %v755_v0, %v354_v39  ;;  %v324_v51 = vmul.f32 %v483_v30, %v713_v16 }
 0x165   :  { %412 = vst [vmem:[#allocation5 + $0x90] sm:$0xff] %v387_v40  ;;  %v357_v42 = vmul.f32 %v749_v58, %v325_v41 }
 0x166   :  { %v485_v14 = vpop.eup %484  ;;  %411 = vst [vmem:[#allocation5 + $0x88] sm:$0xff] %v386_v36  ;;  %v356_v15 = vmul.f32 %v749_v58, %v324_v51 }
 0x167   :  { %v487_v46 = vpop.eup %486  ;;  %v389_v47 = vadd.f32 %v755_v0, %v357_v42  ;;  %v327_v4 = vmul.f32 %v485_v14, %v730_v3 }
 0x168   :  { %v388_v48 = vadd.f32 %v755_v0, %v356_v15  ;;  %v326_v59 = vmul.f32 %v487_v46, %v723_v18 }
 0x169   :  { %414 = vst [vmem:[#allocation5 + $0xa0] sm:$0xff] %v389_v47  ;;  %v359_v49 = vmul.f32 %v749_v58, %v327_v4 }
 0x16a   :  { %v489_v16 = vpop.eup %488  ;;  %413 = vst [vmem:[#allocation5 + $0x98] sm:$0xff] %v388_v48  ;;  %v358_v50 = vmul.f32 %v749_v58, %v326_v59 }
 0x16b   :  { %v491_v61 = vpop.eup %490  ;;  %v391_v17 = vadd.f32 %v755_v0, %v359_v49  ;;  %v329_v44 = vmul.f32 %v489_v16, %v740_v9 }
 0x16c   :  { %v390_v54 = vadd.f32 %v755_v0, %v358_v50  ;;  %v328_v3 = vmul.f32 %v491_v61, %v733_v20 }
 0x16d   :  { %416 = vst [vmem:[#allocation5 + $0xb0] sm:$0xff] %v391_v17  ;;  %v361_v55 = vmul.f32 %v749_v58, %v329_v44 }
 0x16e   :  { %415 = vst [vmem:[#allocation5 + $0xa8] sm:$0xff] %v390_v54  ;;  %v360_v18 = vmul.f32 %v749_v58, %v328_v3 }
 0x16f   :  { %v393_v56 = vadd.f32 %v755_v0, %v361_v55 }
 0x170   :  { %v392_v37 = vadd.f32 %v755_v0, %v360_v18 }
 0x171   :  { %418 = vst [vmem:[#allocation5 + $0xc0] sm:$0xff] %v393_v56 }
 0x172   :  { %417 = vst [vmem:[#allocation5 + $0xb8] sm:$0xff] %v392_v37 }
 0x173   :  { %523 = shalt.err (!%p520_p9)
}
 0x174   :  { %430 = dma.vmem_to_hbm [thread:$0]  %s425_s2, 3200, %s840_s3, [#allocation4], %s537_s15, %s537_s15, %s538_s16  }
 0x175   :  { %534 = dma.done.wait [#allocation4], 3200  }
 0x176   :  { %535 = vsyncadd [#allocation4], 4294964096 }
 0x177   :  { %434 = vsyncpa [#allocation3], 1 }
 0x178   :  { %435 = vsyncpa [#allocation4], 1 }

</bundles_post_ra>
